<compile_context>
chip_gen: v7x
topology: tpu7x:2x2x1
jax: 0.10.0
libtpu: 0.0.40
codegen_flags: <defaults>
</compile_context>

<pallas_src>
import jax
import jax.numpy as jnp
from jax.experimental import pallas as pl
from jax.experimental.pallas import tpu as pltpu

FEATURES = 32
LANE = 128


def affine_layer_kernel(x_ref, logdet_ref,
                        w1_ref, b1_ref, w2_ref, b2_ref, w3_ref, b3_ref,
                        xout_ref, logdet_out_ref):
    # x tile: (2, TN) with row 0 = x1, row 1 = x2; logdet tile: (1, TN).
    x1 = x_ref[0:1, :]                      # (1, TN)
    x2 = x_ref[1:2, :]                      # (1, TN)

    # CouplingNet (transposed): Linear(1,F) -> ReLU -> Linear(F,F) -> ReLU -> Linear(F,2)
    # First layer has K=1, so it is a broadcasted multiply (VPU), not an MXU matmul.
    h1 = jnp.maximum(w1_ref[...] * x2 + b1_ref[...], 0.0)                  # (F, TN)
    h2 = jnp.maximum(
        jnp.dot(w2_ref[...], h1, preferred_element_type=jnp.float32)
        + b2_ref[...], 0.0)                                                # (F, TN)
    s_t = jnp.dot(w3_ref[...], h2, preferred_element_type=jnp.float32) \
        + b3_ref[...]                                                      # (2, TN)

    s = s_t[0:1, :]                         # (1, TN)
    t = s_t[1:2, :]                         # (1, TN)

    x1_new = x1 * s + t                     # (1, TN)

    # Single dense, lane-wide store of the whole output block.
    xout_ref[...] = jnp.concatenate([x1_new, x2], axis=0)          # (2, TN)
    logdet_out_ref[...] = logdet_ref[...] + jnp.log(jnp.abs(s))    # (1, TN)


def affine_layer_forward(x, logdet, params, *, tile_n=2048):
    """x: (N, 2) f32, logdet: (N,) f32. Returns (x_out (N, 2), logdet_out (N,))."""
    N = x.shape[0]
    w1, b1, w2, b2, w3, b3 = params
    F = w1.shape[1]

    # --- wrapper-side layout plumbing (cheap): transpose weights/activations ---
    w1t = jnp.asarray(w1).T.reshape(F, 1)   # (F, 1)
    b1t = jnp.asarray(b1).reshape(F, 1)     # (F, 1)
    w2t = jnp.asarray(w2).T                 # (F, F)
    b2t = jnp.asarray(b2).reshape(F, 1)     # (F, 1)
    w3t = jnp.asarray(w3).T                 # (2, F)
    b3t = jnp.asarray(b3).reshape(2, 1)     # (2, 1)

    # Pick a lane-aligned tile; pad N up to a multiple of it (ragged N handled
    # by padding, padded columns are sliced off after the call).
    tile = max(LANE, min(int(tile_n), pl.cdiv(N, LANE) * LANE))
    tile = pl.cdiv(tile, LANE) * LANE
    n_pad = pl.cdiv(N, tile) * tile

    x_t = jnp.pad(x.T.astype(jnp.float32), ((0, 0), (0, n_pad - N)))        # (2, n_pad)
    ld_t = jnp.pad(logdet.reshape(1, N).astype(jnp.float32),
                   ((0, 0), (0, n_pad - N)))                                # (1, n_pad)

    grid = (n_pad // tile,)

    def row_map(i):
        return (0, i)

    # Small weights live in VMEM for the whole kernel (no per-step DMA/pipelining).
    vmem_resident = pl.BlockSpec(memory_space=pltpu.MemorySpace.VMEM)

    x_out_t, ld_out_t = pl.pallas_call(
        affine_layer_kernel,
        out_shape=(
            jax.ShapeDtypeStruct((2, n_pad), jnp.float32),
            jax.ShapeDtypeStruct((1, n_pad), jnp.float32),
        ),
        grid_spec=pltpu.PrefetchScalarGridSpec(
            num_scalar_prefetch=0,
            grid=grid,
            in_specs=[
                pl.BlockSpec((2, tile), row_map),    # x (lane-major)
                pl.BlockSpec((1, tile), row_map),    # logdet (lane-major)
                vmem_resident,                       # w1t (F, 1)
                vmem_resident,                       # b1t (F, 1)
                vmem_resident,                       # w2t (F, F)
                vmem_resident,                       # b2t (F, 1)
                vmem_resident,                       # w3t (2, F)
                vmem_resident,                       # b3t (2, 1)
            ],
            out_specs=[
                pl.BlockSpec((2, tile), row_map),
                pl.BlockSpec((1, tile), row_map),
            ],
        ),
        compiler_params=pltpu.CompilerParams(
            dimension_semantics=("parallel",)),
    )(x_t, ld_t, w1t, b1t, w2t, b2t, w3t, b3t)

    return x_out_t[:, :N].T, ld_out_t[0, :N]


def init_coupling_net_params(key, features):
    """Deterministic init mimicking nn.Linear (uniform +-1/sqrt(fan_in))."""
    ks = jax.random.split(key, 6)

    def u(k, shape, fan_in):
        bound = 1.0 / jnp.sqrt(fan_in)
        return jax.random.uniform(k, shape, jnp.float32, -bound, bound)

    w1 = u(ks[0], (1, features), 1.0)          # Linear(1, F): weight.T
    b1 = u(ks[1], (1, features), 1.0)
    w2 = u(ks[2], (features, features), float(features))
    b2 = u(ks[3], (1, features), float(features))
    w3 = u(ks[4], (features, 2), float(features))
    b3 = u(ks[5], (1, 2), float(features))
    return (w1, b1, w2, b2, w3, b3)


def affine_layer_forward_ref(x, logdet, params):
    """Plain-JAX reference for correctness check."""
    w1, b1, w2, b2, w3, b3 = params
    x1 = x[:, 0]
    x2 = x[:, 1]
    h = jnp.maximum(x2[:, None] @ w1 + b1, 0.0)
    h = jnp.maximum(h @ w2 + b2, 0.0)
    s_t = h @ w3 + b3
    s = s_t[:, 0]
    t = s_t[:, 1]
    x1n = x1 * s + t
    x_out = jnp.stack([x1n, x2], axis=1)
    logdet_out = logdet + jnp.log(jnp.abs(s))
    return x_out, logdet_out


if __name__ == "__main__":
    key = jax.random.PRNGKey(0)
    k_params, k_x, k_ld = jax.random.split(key, 3)

    # TODO(synk): original script loads points from 'data.tar'; deterministic
    # random points are used here instead.
    N = 300  # number of 2-D points (ragged on purpose to exercise padding path)
    params = init_coupling_net_params(k_params, FEATURES)
    x = jax.random.normal(k_x, (N, 2), jnp.float32)
    logdet = jax.random.normal(k_ld, (N,), jnp.float32)

    x_out, logdet_out = affine_layer_forward(x, logdet, params)
    jax.block_until_ready((x_out, logdet_out))

    x_ref, logdet_ref = affine_layer_forward_ref(x, logdet, params)
    assert jnp.allclose(x_out, x_ref, atol=2e-5, rtol=1e-5)
    assert jnp.allclose(logdet_out, logdet_ref, atol=2e-5, rtol=1e-5)

    print("KERNEL_OK")
</pallas_src>

<mosaic_0001>
module attributes {stable_mosaic.version = 11 : i64} {
  func.func @affine_layer_kernel(%arg0: i32, %arg1: memref<2x384xf32, #tpu.memory_space<vmem>>, %arg2: memref<1x384xf32, #tpu.memory_space<vmem>>, %arg3: memref<32x1xf32, #tpu.memory_space<vmem>>, %arg4: memref<32x1xf32, #tpu.memory_space<vmem>>, %arg5: memref<32x32xf32, #tpu.memory_space<vmem>>, %arg6: memref<32x1xf32, #tpu.memory_space<vmem>>, %arg7: memref<2x32xf32, #tpu.memory_space<vmem>>, %arg8: memref<2x1xf32, #tpu.memory_space<vmem>>, %arg9: memref<2x384xf32, #tpu.memory_space<vmem>>, %arg10: memref<1x384xf32, #tpu.memory_space<vmem>>) attributes {dimension_semantics = [#tpu.dimension_semantics<parallel>], iteration_bounds = array<i64: 1>, scalar_prefetch = 0 : i64, scratch_operands = 0 : i64, tpu.core_type = #tpu.core_type<tc>, window_params = [{transform_indices = @transform_0, window_bounds = array<i64: 2, 384>}, {transform_indices = @transform_1, window_bounds = array<i64: 1, 384>}, {pipeline_mode = #tpu.pipeline_mode<synchronous>, transform_indices = @transform_2, window_bounds = array<i64: 32, 1>}, {pipeline_mode = #tpu.pipeline_mode<synchronous>, transform_indices = @transform_3, window_bounds = array<i64: 32, 1>}, {pipeline_mode = #tpu.pipeline_mode<synchronous>, transform_indices = @transform_4, window_bounds = array<i64: 32, 32>}, {pipeline_mode = #tpu.pipeline_mode<synchronous>, transform_indices = @transform_5, window_bounds = array<i64: 32, 1>}, {pipeline_mode = #tpu.pipeline_mode<synchronous>, transform_indices = @transform_6, window_bounds = array<i64: 2, 32>}, {pipeline_mode = #tpu.pipeline_mode<synchronous>, transform_indices = @transform_7, window_bounds = array<i64: 2, 1>}, {transform_indices = @transform_8, window_bounds = array<i64: 2, 384>}, {transform_indices = @transform_9, window_bounds = array<i64: 1, 384>}]} {
    %c0 = arith.constant 0 : index
    %c0_0 = arith.constant 0 : index
    %0 = vector.load %arg1[%c0, %c0_0] : memref<2x384xf32, #tpu.memory_space<vmem>>, vector<1x384xf32>
    %c1 = arith.constant 1 : index
    %c0_1 = arith.constant 0 : index
    %1 = vector.load %arg1[%c1, %c0_1] : memref<2x384xf32, #tpu.memory_space<vmem>>, vector<1x384xf32>
    %c0_2 = arith.constant 0 : index
    %c0_3 = arith.constant 0 : index
    %2 = vector.load %arg3[%c0_2, %c0_3] : memref<32x1xf32, #tpu.memory_space<vmem>>, vector<32x1xf32>
    %3 = vector.broadcast %2 : vector<32x1xf32> to vector<32x384xf32>
    %4 = vector.broadcast %1 : vector<1x384xf32> to vector<32x384xf32>
    %5 = arith.mulf %3, %4 : vector<32x384xf32>
    %c0_4 = arith.constant 0 : index
    %c0_5 = arith.constant 0 : index
    %6 = vector.load %arg4[%c0_4, %c0_5] : memref<32x1xf32, #tpu.memory_space<vmem>>, vector<32x1xf32>
    %7 = vector.broadcast %6 : vector<32x1xf32> to vector<32x384xf32>
    %8 = arith.addf %5, %7 : vector<32x384xf32>
    %cst = arith.constant 0.000000e+00 : f32
    %9 = vector.broadcast %cst : f32 to vector<32x384xf32>
    %10 = arith.maximumf %8, %9 : vector<32x384xf32>
    %c0_6 = arith.constant 0 : index
    %c0_7 = arith.constant 0 : index
    %11 = vector.load %arg5[%c0_6, %c0_7] : memref<32x32xf32, #tpu.memory_space<vmem>>, vector<32x32xf32>
    %cst_8 = arith.constant dense<0.000000e+00> : vector<32x384xf32>
    %12 = tpu.matmul %11, %10, %cst_8 {dimension_numbers = #tpu.dot_dimension_numbers<[1], [0], [0], [1], [0, 0, 1, 1], [], []>} : vector<32x32xf32>, vector<32x384xf32>, vector<32x384xf32> -> vector<32x384xf32>
    %c0_9 = arith.constant 0 : index
    %c0_10 = arith.constant 0 : index
    %13 = vector.load %arg6[%c0_9, %c0_10] : memref<32x1xf32, #tpu.memory_space<vmem>>, vector<32x1xf32>
    %14 = vector.broadcast %13 : vector<32x1xf32> to vector<32x384xf32>
    %15 = arith.addf %12, %14 : vector<32x384xf32>
    %cst_11 = arith.constant 0.000000e+00 : f32
    %16 = vector.broadcast %cst_11 : f32 to vector<32x384xf32>
    %17 = arith.maximumf %15, %16 : vector<32x384xf32>
    %c0_12 = arith.constant 0 : index
    %c0_13 = arith.constant 0 : index
    %18 = vector.load %arg7[%c0_12, %c0_13] : memref<2x32xf32, #tpu.memory_space<vmem>>, vector<2x32xf32>
    %cst_14 = arith.constant dense<0.000000e+00> : vector<2x384xf32>
    %19 = tpu.matmul %18, %17, %cst_14 {dimension_numbers = #tpu.dot_dimension_numbers<[1], [0], [0], [1], [0, 0, 1, 1], [], []>} : vector<2x32xf32>, vector<32x384xf32>, vector<2x384xf32> -> vector<2x384xf32>
    %c0_15 = arith.constant 0 : index
    %c0_16 = arith.constant 0 : index
    %20 = vector.load %arg8[%c0_15, %c0_16] : memref<2x1xf32, #tpu.memory_space<vmem>>, vector<2x1xf32>
    %21 = vector.broadcast %20 : vector<2x1xf32> to vector<2x384xf32>
    %22 = arith.addf %19, %21 : vector<2x384xf32>
    %23 = vector.extract_strided_slice %22 {offsets = [0, 0], sizes = [1, 384], strides = [1, 1]} : vector<2x384xf32> to vector<1x384xf32>
    %24 = vector.extract_strided_slice %22 {offsets = [1, 0], sizes = [1, 384], strides = [1, 1]} : vector<2x384xf32> to vector<1x384xf32>
    %25 = arith.mulf %0, %23 : vector<1x384xf32>
    %26 = arith.addf %25, %24 : vector<1x384xf32>
    %27 = tpu.concatenate %26, %1 in 0 : vector<1x384xf32>, vector<1x384xf32> -> vector<2x384xf32>
    %c0_17 = arith.constant 0 : index
    %c0_18 = arith.constant 0 : index
    %28 = vector.load %arg9[%c0_17, %c0_18] : memref<2x384xf32, #tpu.memory_space<vmem>>, vector<2x384xf32>
    tpu.vector_store %arg9[%c0_17, %c0_18], %27 {strides = array<i32>} : memref<2x384xf32, #tpu.memory_space<vmem>>, vector<2x384xf32>,
    %c0_19 = arith.constant 0 : index
    %c0_20 = arith.constant 0 : index
    %29 = vector.load %arg2[%c0_19, %c0_20] : memref<1x384xf32, #tpu.memory_space<vmem>>, vector<1x384xf32>
    %30 = math.absf %23 : vector<1x384xf32>
    %31 = math.log %30 : vector<1x384xf32>
    %32 = arith.addf %29, %31 : vector<1x384xf32>
    %c0_21 = arith.constant 0 : index
    %c0_22 = arith.constant 0 : index
    %33 = vector.load %arg10[%c0_21, %c0_22] : memref<1x384xf32, #tpu.memory_space<vmem>>, vector<1x384xf32>
    tpu.vector_store %arg10[%c0_21, %c0_22], %32 {strides = array<i32>} : memref<1x384xf32, #tpu.memory_space<vmem>>, vector<1x384xf32>,
    return
  }
  func.func @transform_0(%arg0: i32) -> (i32, i32) {
    %c0_i32 = arith.constant 0 : i32
    %c0_i32_0 = arith.constant 0 : i32
    return %c0_i32, %arg0 : i32, i32
  }
  func.func @transform_1(%arg0: i32) -> (i32, i32) {
    %c0_i32 = arith.constant 0 : i32
    %c0_i32_0 = arith.constant 0 : i32
    return %c0_i32, %arg0 : i32, i32
  }
  func.func @transform_2(%arg0: i32) -> (i32, i32) {
    %c0_i32 = arith.constant 0 : i32
    %c0_i32_0 = arith.constant 0 : i32
    %c0_i32_1 = arith.constant 0 : i32
    return %c0_i32, %c0_i32_0 : i32, i32
  }
  func.func @transform_3(%arg0: i32) -> (i32, i32) {
    %c0_i32 = arith.constant 0 : i32
    %c0_i32_0 = arith.constant 0 : i32
    %c0_i32_1 = arith.constant 0 : i32
    return %c0_i32, %c0_i32_0 : i32, i32
  }
  func.func @transform_4(%arg0: i32) -> (i32, i32) {
    %c0_i32 = arith.constant 0 : i32
    %c0_i32_0 = arith.constant 0 : i32
    %c0_i32_1 = arith.constant 0 : i32
    return %c0_i32, %c0_i32_0 : i32, i32
  }
  func.func @transform_5(%arg0: i32) -> (i32, i32) {
    %c0_i32 = arith.constant 0 : i32
    %c0_i32_0 = arith.constant 0 : i32
    %c0_i32_1 = arith.constant 0 : i32
    return %c0_i32, %c0_i32_0 : i32, i32
  }
  func.func @transform_6(%arg0: i32) -> (i32, i32) {
    %c0_i32 = arith.constant 0 : i32
    %c0_i32_0 = arith.constant 0 : i32
    %c0_i32_1 = arith.constant 0 : i32
    return %c0_i32, %c0_i32_0 : i32, i32
  }
  func.func @transform_7(%arg0: i32) -> (i32, i32) {
    %c0_i32 = arith.constant 0 : i32
    %c0_i32_0 = arith.constant 0 : i32
    %c0_i32_1 = arith.constant 0 : i32
    return %c0_i32, %c0_i32_0 : i32, i32
  }
  func.func @transform_8(%arg0: i32) -> (i32, i32) {
    %c0_i32 = arith.constant 0 : i32
    %c0_i32_0 = arith.constant 0 : i32
    return %c0_i32, %arg0 : i32, i32
  }
  func.func @transform_9(%arg0: i32) -> (i32, i32) {
    %c0_i32 = arith.constant 0 : i32
    %c0_i32_0 = arith.constant 0 : i32
    return %c0_i32, %arg0 : i32, i32
  }
}

</mosaic_0001>

<bundles_post_ra>
// kernel: tpu_custom_call.1
= control target key start
LH: loop header
LB: loop body
LE: loop exit
PB: predicated region body
PF: predicated region fallthrough
CT: control target
= control target key end

     0   :  { %15 = vsyncpa [#allocation3], 0  ;;  %v807_v2 = vmov 0   ;;  %s1023_s0 = inlined_call_operand.vmem [shape: f32[2,384], index: 0, kind: input, shape index: {}]   ;;  %s1024_s1 = inlined_call_operand.vmem [shape: f32[1,384], index: 1, kind: input, shape index: {}]   ;;  %s1025_s2 = inlined_call_operand.vmem [shape: f32[32,1], index: 2, kind: input, shape index: {}]   ;;  %s1026_s3 = inlined_call_operand.vmem [shape: f32[32,1], index: 3, kind: input, shape index: {}]   ;;  %s1027_s4 = inlined_call_operand.vmem [shape: f32[32,32], index: 4, kind: input, shape index: {}]   ;;  %s1028_s5 = inlined_call_operand.vmem [shape: f32[32,1], index: 5, kind: input, shape index: {}]   ;;  %s1029_s6 = inlined_call_operand.vmem [shape: f32[2,32], index: 6, kind: input, shape index: {}]   ;;  %s1030_s7 = inlined_call_operand.vmem [shape: f32[2,1], index: 7, kind: input, shape index: {}]   ;;  %s1031_s8 = inlined_call_operand.hbm [shape: f32[2,384], index: 8, kind: output, shape index: {0}]   ;;  %s1032_s9 = inlined_call_operand.hbm [shape: f32[1,384], index: 9, kind: output, shape index: {1}]  }
   0x1   :  { %v88_v0 = vld [vmem:[%s1026_s3] sm:$0xff]  ;;  %752 = vset.pattern.permute.xlu1 %v807_v2  ;;  %751 = vset.pattern.permute.xlu0 %v807_v2  ;;  %v89_v3 = vld [vmem:[%s1026_s3 + $0x8] sm:$0xff] }
   0x2   :  { %v36_v1 = vld [vmem:[%s1025_s2] sm:$0xff]  ;;  %94 = vperm.xlu1 %752, %v88_v0   ;;  %v37_v4 = vld [vmem:[%s1025_s2 + $0x8] sm:$0xff] }
   0x3   :  { %42 = vperm.xlu0 %751, %v36_v1  }
   0x4   :  { %16 = vsyncpa [#allocation5], 0  ;;  %v39_v5 = vld [vmem:[%s1025_s2 + $0x18] sm:$0xff]  ;;  %v38_v6 = vld [vmem:[%s1025_s2 + $0x10] sm:$0xff]  ;;  %vm164_vm0 = vcmask 261120   ;;  %v808_v15 = vmov 0.0   ;;  %v61_v16 = vlaneseq }
   0x5   :  { %v91_v7 = vld [vmem:[%s1026_s3 + $0x18] sm:$0xff]  ;;  %v90_v8 = vld [vmem:[%s1026_s3 + $0x10] sm:$0xff]  ;;  %v141_v9 = vld [vmem:[%s1028_s5 + $0x8] sm:$0xff]  ;;  %241 = vmatprep.mubr.f32.mxu0 %v808_v15  ;;  %vm810_vm1 = vmmov 0   ;;  %vm568_vm2 = vcmask 1040384   ;;  %s814_s25 = smov [#allocation4]  }
   0x6   :  { %99 = vperm.xlu1 %752, %v89_v3   ;;  %v140_v10 = vld [vmem:[%s1028_s5] sm:$0xff]  ;;  %v143_v11 = vld [vmem:[%s1028_s5 + $0x18] sm:$0xff]  ;;  %v142_v12 = vld [vmem:[%s1028_s5 + $0x10] sm:$0xff]  ;;  %v913_v17 = vshrl.u32 %v61_v16, 7  ;;  %s652_s26 = sshll.u32 %s814_s25, 4  ;;  %s653_s26 = int_to_ptr.vmem [resolvable:$true] %s652_s26 }
   0x7   :  { %47 = vperm.xlu0 %751, %v37_v4   ;;  %v904_v13 = vld [vmem:[%s1027_s4] sm:$0xff] }
   0x8   :  { %v364_v14 = vld [vmem:[%s1030_s7] sm:$0x3]  ;;  %696 = vmatprep.mubr.msk.f32.mxu1 %vm164_vm0, %v904_v13  ;;  %v67_v18 = vsub.s32 1, %v913_v17  ;;  %v71_v19 = vsub.s32 2, %v913_v17  ;;  %v63_v20 = vsub.s32 0, %v913_v17 }
   0x9   :  { %v664_v21 = vld [vmem:[%s1023_s0 + $0x1] ss:$2 sm:$0x7] }
   0xa   :  { %57 = vperm.xlu1 %752, %v39_v5   ;;  %v923_v22 = vrot.slane %v664_v21, %v67_v18  ;;  %v927_v23 = vrot.slane %v664_v21, %v71_v19  ;;  %v931_v24 = vrot.slane %v664_v21, %v63_v20 }
   0xb   :  { %52 = vperm.xlu0 %751, %v38_v6  }
   0xe   :  { %109 = vperm.xlu1 %752, %v91_v7  }
   0xf   :  { %104 = vperm.xlu0 %751, %v90_v8  }
  0x12   :  { %151 = vperm.xlu1 %752, %v141_v9  }
  0x13   :  { %146 = vperm.xlu0 %751, %v140_v10  }
  0x16   :  { %161 = vperm.xlu1 %752, %v143_v11   ;;  %v137_v11 = vld [vmem:[%s1027_s4 + $0x8] sm:$0xff] }
  0x17   :  { %156 = vperm.xlu0 %751, %v142_v12   ;;  %v138_v12 = vld [vmem:[%s1027_s4 + $0x10] sm:$0xff] }
  0x1b   :  { %367 = vperm.xlu0 %751, %v364_v14   ;;  %v139_v14 = vld [vmem:[%s1027_s4 + $0x18] sm:$0xff] }
  0x81   :  { %v95_v25 = vpop.permute.xlu1 %94 }
  0x82   :  { %v43_v26 = vpop.permute.xlu0 %42 }
  0x83   :  { %v77_v27 = vmul.f32 %v923_v22, %v43_v26  ;;  %v78_v28 = vmul.f32 %v927_v23, %v43_v26  ;;  %v76_v29 = vmul.f32 %v931_v24, %v43_v26 }
  0x85   :  { %v100_v30 = vpop.permute.xlu1 %99  ;;  %v113_v32 = vadd.f32 %v95_v25, %v77_v27  ;;  %v114_v36 = vadd.f32 %v95_v25, %v78_v28  ;;  %v112_v37 = vadd.f32 %v95_v25, %v76_v29 }
  0x86   :  { %v48_v31 = vpop.permute.xlu0 %47 }
  0x87   :  { %v79_v33 = vmul.f32 %v931_v24, %v48_v31  ;;  %v80_v34 = vmul.f32 %v923_v22, %v48_v31  ;;  %v81_v35 = vmul.f32 %v927_v23, %v48_v31  ;;  %v125_v43 = vmax.f32 %v113_v32, 0.0 }
  0x88   :  { %v126_v44 = vmax.f32 %v114_v36, 0.0  ;;  %v124_v48 = vmax.f32 %v112_v37, 0.0 }
  0x89   :  { %v116_v38 = vadd.f32 %v100_v30, %v80_v34  ;;  %v117_v39 = vadd.f32 %v100_v30, %v81_v35  ;;  %v115_v40 = vadd.f32 %v100_v30, %v79_v33  ;;  %v58_v41 = vpop.permute.xlu1 %57 }
  0x8a   :  { %v53_v42 = vpop.permute.xlu0 %52  ;;  %v85_v45 = vmul.f32 %v931_v24, %v58_v41  ;;  %v86_v49 = vmul.f32 %v923_v22, %v58_v41  ;;  %v87_v50 = vmul.f32 %v927_v23, %v58_v41 }
  0x8b   :  { %v128_v46 = vmax.f32 %v116_v38, 0.0  ;;  %v129_v47 = vmax.f32 %v117_v39, 0.0  ;;  %v82_v51 = vmul.f32 %v931_v24, %v53_v42  ;;  %v127_v52 = vmax.f32 %v115_v40, 0.0 }
  0x8c   :  { %v83_v53 = vmul.f32 %v923_v22, %v53_v42  ;;  %v84_v54 = vmul.f32 %v927_v23, %v53_v42 }
  0x8d   :  { %v110_v55 = vpop.permute.xlu1 %109  ;;  %v713_v57 = vpack.c.bf16 %v128_v46, %v125_v43  ;;  %v721_v58 = vpack.c.bf16 %v129_v47, %v126_v44  ;;  %v715_v1 = vpack.c.bf16 %v127_v52, %v124_v48 }
  0x8e   :  { %v105_v56 = vpop.permute.xlu0 %104  ;;  %v121_v59 = vadd.f32 %v110_v55, %v85_v45  ;;  %v122_v60 = vadd.f32 %v110_v55, %v86_v49  ;;  %v123_v61 = vadd.f32 %v110_v55, %v87_v50 }
  0x8f   :  { %v118_v62 = vadd.f32 %v105_v56, %v82_v51  ;;  %v119_v63 = vadd.f32 %v105_v56, %v83_v53  ;;  %v120_v0 = vadd.f32 %v105_v56, %v84_v54  ;;  %714 = vmatprep.subr.bf16.mxu0 %v713_v57  ;;  %722 = vmatprep.subr.bf16.mxu1 %v721_v58 }
  0x90   :  { %v133_v2 = vmax.f32 %v121_v59, 0.0  ;;  %v134_v3 = vmax.f32 %v122_v60, 0.0  ;;  %v135_v4 = vmax.f32 %v123_v61, 0.0  ;;  %724 = vmatpush3.bf16.msra.mxu1 %v721_v58  ;;  %716 = vmatpush1.bf16.msra.mxu0 %v715_v1  ;;  %v363_v60 = vld [vmem:[%s1029_s6] sm:$0x3] }
  0x91   :  { %v130_v5 = vmax.f32 %v118_v62, 0.0  ;;  %v131_v6 = vmax.f32 %v119_v63, 0.0  ;;  %v132_v7 = vmax.f32 %v120_v0, 0.0  ;;  %v152_v21 = vpop.permute.xlu1 %151 }
  0x92   :  { %v147_v25 = vpop.permute.xlu0 %146 }
  0x93   :  { %v719_v8 = vpack.c.bf16 %v133_v2, %v130_v5  ;;  %v717_v9 = vpack.c.bf16 %v134_v3, %v131_v6  ;;  %v725_v10 = vpack.c.bf16 %v135_v4, %v132_v7 }
  0x95   :  { %718 = vmatprep.subr.bf16.mxu0 %v717_v9  ;;  %726 = vmatprep.subr.bf16.mxu1 %v725_v10  ;;  %v162_v32 = vpop.permute.xlu1 %161 }
  0x96   :  { %720 = vmatpush1.bf16.msra.mxu0 %v719_v8  ;;  %728 = vmatpush3.bf16.msra.mxu1 %v725_v10  ;;  %v157_v33 = vpop.permute.xlu0 %156  ;;  %v811_v8 = vmov 1966171168  }
  0x97   :  { %v519_v9 = vunpack.c.l.s4 %v811_v8 }
  0x99   :  { %665 = vmatmul.mubr.msk.f32.vlgmr.msra.gmra.mrb[0].mxu0 %vm164_vm0, %v904_v13  ;;  %697 = vmatmul.mubr.msk.f32.vlgmr.msra.gmra.mrb[0].mxu1 %vm164_vm0, %v137_v11  ;;  %v809_v13 = vmov 0.0|0.0  }
  0x9a   :  { %247 = vmatprep.mubr.f32.mxu0 %v808_v15  ;;  %699 = vmatprep.mubr.msk.f32.mxu1 %vm164_vm0, %v138_v12  ;;  %v368_v10 = vpop.permute.xlu0 %367 }
  0x9b   :  { %737 = vmatprep.subr.bf16.mxu0 %v809_v13 }
  0x9d   :  { %666 = vmatmul.mubr.msk.f32.gmra.mrb[2].mxu0 %vm164_vm0, %v137_v11  ;;  %700 = vmatmul.mubr.msk.f32.gmra.mrb[2].mxu1 %vm164_vm0, %v139_v14 }
  0x9e   :  { %253 = vmatprep.mubr.f32.mxu0 %v808_v15  ;;  %437 = vmatprep.mubr.f32.mxu1 %v808_v15 }
  0xa1   :  { %667 = vmatmul.mubr.msk.f32.gmra.mrb[4].mxu0 %vm164_vm0, %v138_v12  ;;  %v520_v12 = vunpack.c.0.s8 %v519_v9 }
  0xa2   :  { %259 = vmatprep.mubr.f32.mxu0 %v808_v15 }
  0xa5   :  { %668 = vmatmul.mubr.msk.f32.gmra.mrb[6].mxu0 %vm164_vm0, %v139_v14 }
  0xa6   :  { %710 = vmatprep.mubr.msk.f32.mxu0 %vm810_vm1, %v808_v15 }
 0x16c   :  { %v243_v26 = vpop.f32.mrb[0].mxu0  ;;  %v698_v27 = vpop.f32.mrb[0].mxu1 }
 0x16d   :  { %v338_v28 = vadd.f32 %v698_v27, %v152_v21  ;;  %v245_v29 = vpop.f32.mrb[1].mxu0  ;;  %v332_v30 = vpop.f32.mrb[1].mxu1  ;;  %v244_v34 = vadd.f32 %v243_v26, %v147_v25  ;;  %v973_v26 = vsub.s32 %v520_v12, %v913_v17 }
 0x16e   :  { %v333_v31 = vadd.f32 %v332_v30, %v147_v25  ;;  %v246_v36 = vadd.f32 %v245_v29, %v147_v25 }
 0x16f   :  { %v356_v35 = vmax.f32 %v338_v28, 0.0  ;;  %v351_v46 = vmax.f32 %v244_v34, 0.0 }
 0x170   :  { %v353_v37 = vmax.f32 %v333_v31, 0.0  ;;  %v249_v38 = vpop.f32.mrb[2].mxu0  ;;  %v701_v39 = vpop.f32.mrb[2].mxu1  ;;  %v352_v49 = vmax.f32 %v246_v36, 0.0  ;;  %v812_v36 = vmov 1983009808  }
 0x171   :  { %v250_v40 = vadd.f32 %v249_v38, %v152_v21  ;;  %v348_v41 = vadd.f32 %v701_v39, %v162_v32  ;;  %v251_v42 = vpop.f32.mrb[3].mxu0  ;;  %v342_v15 = vpop.f32.mrb[3].mxu1 }
 0x172   :  { %v738_v43 = vpack.c.bf16 %v356_v35, %v353_v37  ;;  %v252_v44 = vadd.f32 %v251_v42, %v152_v21  ;;  %v343_v45 = vadd.f32 %v342_v15, %v157_v33  ;;  %v33_v35 = vld [vmem:[%s1023_s0] ss:$2 sm:$0x7]  ;;  %v577_v37 = vunpack.c.l.s4 %v812_v36  ;;  %s813_s0 = smov [#allocation2]  }
 0x173   :  { %v354_v47 = vmax.f32 %v250_v40, 0.0  ;;  %v362_v48 = vmax.f32 %v348_v41, 0.0  ;;  %s642_s22 = sshll.u32 %s813_s0, 4  ;;  %s643_s22 = int_to_ptr.vmem [resolvable:$true] %s642_s22 }
 0x174   :  { %v355_v50 = vmax.f32 %v252_v44, 0.0  ;;  %v359_v51 = vmax.f32 %v343_v45, 0.0  ;;  %v255_v52 = vpop.f32.mrb[4].mxu0  ;;  %739 = vmatpush3.bf16.msra.mxu0 %v738_v43  ;;  %v578_v41 = vunpack.c.0.s8 %v577_v37  ;;  %s759_s27 = scalar_lea.vmem %s643_s22, 96  ;;  %p764_p1 = scmp.lt.s32.totalorder %s643_s22, %s643_s22 }
 0x175   :  { %v731_v53 = vpack.c.bf16 %v354_v47, %v351_v46  ;;  %v257_v54 = vpop.f32.mrb[5].mxu0  ;;  %740 = vmatprep.subr.bf16.mxu0 %v809_v13  ;;  %v256_v57 = vadd.f32 %v255_v52, %v157_v33  ;;  %p760_p0 = scmp.ne.s32.totalorder %s643_s22, %s759_s27  ;;  %p765_p2 = scmp.lt.s32.totalorder %s759_s27, %s759_s27 }
 0x176   :  { %v729_v55 = vpack.c.bf16 %v355_v50, %v352_v49  ;;  %v741_v56 = vpack.c.bf16 %v362_v48, %v359_v51  ;;  %v258_v58 = vadd.f32 %v257_v54, %v157_v33  ;;  %v581_v51 = vsub.s32 %v578_v41, %v913_v17  ;;  %v593_v17 = vld [vmem:[%s1024_s1] sm:$0x7] }
 0x177   :  { %v357_v0 = vmax.f32 %v256_v57, 0.0  ;;  %p766_p3 = por %p765_p2, %p764_p1 }
 0x178   :  { %v261_v59 = vpop.f32.mrb[6].mxu0  ;;  %730 = vmatprep.subr.bf16.mxu1 %v729_v55  ;;  %742 = vmatpush3.bf16.msra.mxu0 %v741_v56  ;;  %v358_v2 = vmax.f32 %v258_v58, 0.0 }
 0x179   :  { %v262_v61 = vadd.f32 %v261_v59, %v162_v32  ;;  %v263_v62 = vpop.f32.mrb[7].mxu0  ;;  %732 = vmatpush1.bf16.msra.mxu1 %v731_v53  ;;  %p767_p4 = pnand %p766_p3, %p760_p0 }
 0x17a   :  { %v264_v63 = vadd.f32 %v263_v62, %v162_v32 }
 0x17b   :  { %v360_v1 = vmax.f32 %v262_v61, 0.0  ;;  %711 = vmatmul.mubr.msk.f32.vlgmr.msra.gmra.mrb[8].mxu0 %vm164_vm0, %v363_v60 }
 0x17c   :  { %v361_v3 = vmax.f32 %v264_v63, 0.0 }
 0x17d   :  { %v735_v4 = vpack.c.bf16 %v360_v1, %v357_v0 }
 0x17e   :  { %v733_v5 = vpack.c.bf16 %v361_v3, %v358_v2 }
 0x180   :  { %734 = vmatprep.subr.bf16.mxu1 %v733_v5 }
 0x181   :  { %736 = vmatpush1.bf16.msra.mxu1 %v735_v4 }
 0x184   :  { %673 = vmatmul.mubr.msk.f32.vlgmr.msra.gmra.mrb[4].mxu1 %vm164_vm0, %v363_v60 }
 0x24e   :  { %v510_v6 = vpop.f32.mrb[8].mxu0 }
 0x24f   :  { %v712_v7 = vpop.f32.mrb[9].mxu0  ;;  %v511_v11 = vadd.f32 %v510_v6, %v368_v10 }
 0x251   :  { %v596_v14 = vand.u32 2147483647, %v511_v11  ;;  %v531_v31 = vrot.slane %v511_v11, %v973_v26 }
 0x253   :  { %753 = vlog2.f32 %v596_v14 }
 0x257   :  { %v439_v13 = vpop.f32.mrb[4].mxu1 }
 0x258   :  { %v440_v21 = vadd.f32 %v439_v13, %v368_v10  ;;  %v441_v25 = vpop.f32.mrb[5].mxu1 }
 0x259   :  { %v442_v27 = vadd.f32 %v441_v25, %v368_v10 }
 0x25a   :  { %v594_v28 = vand.u32 2147483647, %v440_v21 }
 0x25b   :  { %v517_v29 = vcombine.low %v440_v21, %v442_v27  ;;  %v595_v30 = vand.u32 2147483647, %v442_v27 }
 0x25c   :  { %755 = vlog2.f32 %v594_v28 }
 0x25d   :  { %v524_v32 = vrot.slane %v517_v29, %v973_v26  ;;  %757 = vlog2.f32 %v595_v30  ;;  %v754_v42 = vpop.eup %753 }
 0x25e   :  { %v602_v49 = vmul.f32 0.6931472, %v754_v42 }
 0x25f   :  { %v532_v33 = vcombine.low %v524_v32, %v531_v31  ;;  %v542_v34 = vcombine.high %v524_v32, %v531_v31 }
 0x261   :  { %v539_v38 = vrot.slane %v532_v33, %v973_v26  ;;  %v549_v40 = vrot.slane %v542_v34, %v973_v26 }
 0x263   :  { %v541_v39 = vmul.f32 %v539_v38, %v33_v35 }
 0x265   :  { %v551_v15 = vadd.f32 %v549_v40, %v541_v39 }
 0x266   :  { %v756_v43 = vpop.eup %755 }
 0x267   :  { %v758_v44 = vpop.eup %757  ;;  %v598_v45 = vmul.f32 0.6931472, %v756_v43  ;;  %v556_v46 = vrot.slane %v551_v15, %v63_v20  ;;  %v560_v47 = vrot.slane %v551_v15, %v67_v18  ;;  %v564_v48 = vrot.slane %v551_v15, %v71_v19 }
 0x268   :  { %v600_v50 = vmul.f32 0.6931472, %v758_v44  ;;  %v620_v20 = vrot.slane %v602_v49, %v973_v26 }
 0x269   :  { %v569_v52 = vsel %vm568_vm2, %v556_v46, %v931_v24  ;;  %v570_v53 = vsel %vm568_vm2, %v560_v47, %v923_v22  ;;  %v571_v54 = vsel %vm568_vm2, %v564_v48, %v927_v23 }
 0x26a   :  { %v606_v55 = vcombine.low %v598_v45, %v600_v50  ;;  %v575_v56 = vcombine.low %v569_v52, %v570_v53  ;;  %v589_v57 = vrot.slane %v571_v54, %v581_v51 }
 0x26c   :  { %v582_v18 = vrot.slane %v575_v56, %v581_v51  ;;  %v613_v19 = vrot.slane %v606_v55, %v973_v26 }
 0x26e   :  { %v590_v58 = vcombine.low %v582_v18, %v589_v57  ;;  %v621_v59 = vcombine.low %v613_v19, %v620_v20 }
 0x270   :  { %592 = vst [vmem:[#allocation2] sm:$0x3f] %v590_v58  ;;  %v628_v22 = vrot.slane %v621_v59, %v973_v26 }
 0x271   :  { %770 = shalt.err (!%p767_p4)
}
 0x272   :  { %s771_s29 = scalar_lea.hbm %s1031_s8, 96 }
 0x273   :  { %p772_p5 = scmp.ne.s32.totalorder %s1031_s8, %s771_s29  ;;  %p775_p6 = scmp.lt.u32.totalorder %s771_s29, %s1031_s8 }
 0x275   :  { %p777_p7 = pnand %p775_p6, %p772_p5 }
 0x277   :  { %780 = shalt.err (!%p777_p7)
}
 0x278   :  { %645 = dma.vmem_to_hbm [thread:$0]  %s643_s22, 96, %s1031_s8, [#allocation3]   ;;  %vm633_vm3 = vcmp.lt.s32.totalorder %v61_v16, 384  ;;  %v630_v23 = vadd.f32 %v628_v22, %v593_v17 }
 0x279   :  { %s781_s13 = scalar_lea.vmem %s653_s26, 48  ;;  %s785_s5 = scalar_lea.vmem %s653_s26, 64 }
 0x27a   :  { %635 = vst.msk [vmem:[#allocation4] sm:$0x7] %vm633_vm3, %v630_v23  ;;  %p782_p8 = scmp.ne.s32.totalorder %s653_s26, %s781_s13  ;;  %p786_p9 = scmp.lt.s32.totalorder %s653_s26, %s653_s26 }
 0x27b   :  { %p787_p10 = scmp.lt.s32.totalorder %s785_s5, %s781_s13 }
 0x27d   :  { %p788_p11 = por %p787_p10, %p786_p9 }
 0x27f   :  { %p789_p12 = pnand %p788_p11, %p782_p8 }
 0x281   :  { %792 = shalt.err (!%p789_p12)
}
 0x282   :  { %s793_s15 = scalar_lea.hbm %s1032_s9, 48 }
 0x283   :  { %p794_p13 = scmp.ne.s32.totalorder %s1032_s9, %s793_s15  ;;  %p797_p0 = scmp.lt.u32.totalorder %s793_s15, %s1032_s9 }
 0x285   :  { %p799_p1 = pnand %p797_p0, %p794_p13 }
 0x287   :  { %802 = shalt.err (!%p799_p1)
}
 0x288   :  { %655 = dma.vmem_to_hbm [thread:$0]  %s653_s26, 48, %s1032_s9, [#allocation5]  }
 0x289   :  { %803 = dma.done.wait [#allocation3], 96  }
 0x28a   :  { %804 = vsyncadd [#allocation3], 4294967200 }
 0x28b   :  { %805 = dma.done.wait [#allocation5], 48  }
 0x28c   :  { %806 = vsyncadd [#allocation5], 4294967248 }
 0x28d   :  { %662 = vsyncpa [#allocation3], 1 }
 0x28e   :  { %663 = vsyncpa [#allocation5], 1 }

</bundles_post_ra>
